<compile_context>
chip_gen: v6e
topology: v6e:2x2x1
jax: 0.10.0
libtpu: 0.0.40
codegen_flags: <defaults>
</compile_context>

<pallas_src>
import functools

import jax
import jax.numpy as jnp
from jax import lax
from jax.experimental import pallas as pl
from jax.experimental.pallas import tpu as pltpu


def _mha_kernel(x_ref, bias_ref, wkqv_ref, wo_ref, bdmask_ref, o_ref,
                *, n_heads, key_dim, n_nodes):
    H, K, N = n_heads, key_dim, n_nodes
    hk = H * K
    scale = 1.0 / (K ** 0.5)

    x = x_ref[...]                                   # (N, D)
    bias = bias_ref[...]                             # (N, N) head-invariant
    bdmask = bdmask_ref[...]                         # (H*N, H*K) 0/1 block-diag

    # One lane-dense projection matmul: (N, D) @ (D, 3*H*K)
    kqv = jnp.dot(x, wkqv_ref[...], preferred_element_type=jnp.float32)
    k_all = kqv[:, 0 * hk:1 * hk]                    # (N, H*K)
    q_all = kqv[:, 1 * hk:2 * hk]
    v_all = kqv[:, 2 * hk:3 * hk]

    # Block-diagonal expansions: row block h carries only head h's K columns.
    k_bd = bdmask * jnp.tile(k_all, (H, 1))          # (H*N, H*K)
    v_bd = bdmask * jnp.tile(v_all, (H, 1))          # (H*N, H*K)

    # All heads' scores in a single MXU pass: (N, H*K) x (H*N, H*K)^T -> (N, H*N)
    s = lax.dot_general(q_all, k_bd, (((1,), (1,)), ((), ())),
                        preferred_element_type=jnp.float32)

    # One softmax over the whole (N, H, N) tile (per-head key axis last).
    s3 = s.reshape(N, H, N) * scale + bias[:, None, :]
    m = jnp.max(s3, axis=-1, keepdims=True)
    e = jnp.exp(s3 - m)
    p3 = e * pl.reciprocal(jnp.sum(e, axis=-1, keepdims=True), approx=True)
    p = p3.reshape(N, H * N)

    # All heads' P@V in one pass: (N, H*N) @ (H*N, H*K) -> (N, H*K)
    pv = jnp.dot(p, v_bd, preferred_element_type=jnp.float32)
    # sum_h (P_h @ V_h) @ Wo[h] == pv @ Wo_flat : one lane-dense matmul.
    o_ref[...] = jnp.dot(pv, wo_ref[...],
                         preferred_element_type=jnp.float32).astype(o_ref.dtype)


def _pack_params(Wk, Wq, Wv, Wo, n_nodes):
    """Pack Wk|Wq|Wv into (D, 3*H*K), flatten Wo to (H*K, O), build the
    (H*N, H*K) block-diagonal 0/1 mask used to expand K/V per head."""
    H, D, K = Wk.shape
    O = Wo.shape[-1]

    def _pack(w):                                    # (H, D, K) -> (D, H*K)
        return jnp.transpose(w, (1, 0, 2)).reshape(D, H * K)

    w_kqv = jnp.concatenate([_pack(Wk), _pack(Wq), _pack(Wv)], axis=-1)
    wo_flat = Wo.reshape(H * K, O)

    row_head = jnp.arange(H * n_nodes) // n_nodes    # (H*N,)
    col_head = jnp.arange(H * K) // K                # (H*K,)
    bdmask = (row_head[:, None] == col_head[None, :]).astype(jnp.float32)
    return w_kqv, wo_flat, bdmask


def _bias_from_adjacency(adjacency, identity_bias):
    """Head-invariant additive mask/bias (forced self-edge keeps rows finite)."""
    n = adjacency.shape[-1]
    eye = jnp.eye(n, dtype=jnp.float32)
    adj = jnp.maximum(adjacency.astype(jnp.float32), eye)
    return identity_bias * eye - 1e16 * (1.0 - adj)


def vanilla_mha_pallas(node_matrix, adjacency, Wk, Wq, Wv, Wo,
                       identity_bias=0.01):
    """Single-graph forward: no grid, whole arrays resident in VMEM."""
    N, D = node_matrix.shape
    H, _, K = Wk.shape
    O = Wo.shape[-1]

    bias = _bias_from_adjacency(adjacency, identity_bias)
    w_kqv, wo_flat, bdmask = _pack_params(Wk, Wq, Wv, Wo, N)

    kernel = functools.partial(_mha_kernel, n_heads=H, key_dim=K, n_nodes=N)
    vm = pl.BlockSpec(memory_space=pltpu.MemorySpace.VMEM)

    return pl.pallas_call(
        kernel,
        out_shape=jax.ShapeDtypeStruct((N, O), jnp.float32),
        in_specs=[vm, vm, vm, vm, vm],
        out_specs=vm,
    )(node_matrix, bias, w_kqv, wo_flat, bdmask)


def vanilla_mha_pallas_batched(node_matrices, adjacencies, Wk, Wq, Wv, Wo,
                               identity_bias=0.01):
    """Batched forward over B graphs: batch on a 'parallel' grid axis so
    per-graph DMAs pipeline and v7x shards graphs across both TensorCores;
    weights and the block-diagonal mask stay VMEM-resident."""
    B, N, D = node_matrices.shape
    H, _, K = Wk.shape
    O = Wo.shape[-1]

    bias = _bias_from_adjacency(adjacencies, identity_bias)      # (B, N, N)
    w_kqv, wo_flat, bdmask = _pack_params(Wk, Wq, Wv, Wo, N)

    kernel = functools.partial(_mha_kernel, n_heads=H, key_dim=K, n_nodes=N)

    return pl.pallas_call(
        kernel,
        out_shape=jax.ShapeDtypeStruct((B, N, O), jnp.float32),
        grid=(B,),
        in_specs=[
            pl.BlockSpec((None, N, D), lambda b: (b, 0, 0)),      # x (per graph)
            pl.BlockSpec((None, N, N), lambda b: (b, 0, 0)),      # mask/bias
            pl.BlockSpec((D, 3 * H * K), lambda b: (0, 0)),       # packed Wk|Wq|Wv
            pl.BlockSpec((H * K, O), lambda b: (0, 0)),           # flattened Wo
            pl.BlockSpec((H * N, H * K), lambda b: (0, 0)),       # block-diag mask
        ],
        out_specs=pl.BlockSpec((None, N, O), lambda b: (b, 0, 0)),
        compiler_params=pltpu.CompilerParams(
            dimension_semantics=("parallel",)),
    )(node_matrices, bias, w_kqv, wo_flat, bdmask)


def vanilla_mha_ref(node_matrix, adjacency, Wk, Wq, Wv, Wo, identity_bias=0.01):
    """Pure-JAX reference mirroring the PyTorch forward exactly."""
    n = adjacency.shape[0]
    eye = jnp.eye(n, dtype=adjacency.dtype)
    adjacency = jnp.maximum(adjacency, eye)
    keys = jnp.einsum('ij,mjn->min', node_matrix, Wk)
    queries = jnp.einsum('ij,mjn->min', node_matrix, Wq)
    values = jnp.einsum('ij,mjn->min', node_matrix, Wv)
    atts = jnp.einsum('ikn,imn->ikm', queries, keys)
    atts = atts / (Wk.shape[-1] ** 0.5)
    atts = atts + (identity_bias * eye)[None]
    atts = atts - 1e16 * (1.0 - adjacency)[None]
    atts = jax.nn.softmax(atts, axis=-1)
    return jnp.einsum('ikl,ilm,imn->kn', atts, values, Wo)


def _xavier_normal(key, shape, gain):
    # PyTorch fan computation for a 3-D (H, D, K) tensor:
    # fan_in = D * K, fan_out = H * K
    fan_in = shape[1] * shape[2]
    fan_out = shape[0] * shape[2]
    std = gain * (2.0 / (fan_in + fan_out)) ** 0.5
    return std * jax.random.normal(key, shape, dtype=jnp.float32)


if __name__ == "__main__":
    B = 2           # number of graphs (batched path)
    N = 8           # number of graph nodes
    input_dim = 32
    key_dim = 8
    out_dim = 32
    n_heads = 4
    identity_bias = 0.01
    gain = 2.0 ** 0.5

    key = jax.random.PRNGKey(0)
    kx, ka, kk, kq, kv, ko = jax.random.split(key, 6)

    node_b = jax.random.normal(kx, (B, N, input_dim), dtype=jnp.float32)
    adj_b = jax.random.bernoulli(ka, p=0.5, shape=(B, N, N)).astype(jnp.float32)

    Wk = _xavier_normal(kk, (n_heads, input_dim, key_dim), gain)
    Wq = _xavier_normal(kq, (n_heads, input_dim, key_dim), gain)
    Wv = _xavier_normal(kv, (n_heads, input_dim, key_dim), gain)
    Wo = _xavier_normal(ko, (n_heads, key_dim, out_dim), gain)

    # --- Single-graph path (matches the PyTorch forward signature) ---
    out1 = vanilla_mha_pallas(node_b[0], adj_b[0], Wk, Wq, Wv, Wo,
                              identity_bias=identity_bias)
    out1 = jax.block_until_ready(out1)
    ref1 = jax.block_until_ready(
        vanilla_mha_ref(node_b[0], adj_b[0], Wk, Wq, Wv, Wo,
                        identity_bias=identity_bias))
    assert out1.shape == (N, out_dim)
    assert jnp.allclose(out1, ref1, atol=2e-3, rtol=2e-3), (
        f"single-graph max abs err {jnp.max(jnp.abs(out1 - ref1))}")

    # --- Batched path (parallel grid over graphs) ---
    outb = vanilla_mha_pallas_batched(node_b, adj_b, Wk, Wq, Wv, Wo,
                                      identity_bias=identity_bias)
    outb = jax.block_until_ready(outb)
    refb = jnp.stack([
        vanilla_mha_ref(node_b[b], adj_b[b], Wk, Wq, Wv, Wo,
                        identity_bias=identity_bias) for b in range(B)])
    refb = jax.block_until_ready(refb)
    assert outb.shape == (B, N, out_dim)
    assert jnp.allclose(outb, refb, atol=2e-3, rtol=2e-3), (
        f"batched max abs err {jnp.max(jnp.abs(outb - refb))}")

    print("KERNEL_OK")
</pallas_src>

<mosaic_0001>
module attributes {stable_mosaic.version = 11 : i64} {
  func.func @_mha_kernel(%arg0: memref<8x32xf32, #tpu.memory_space<vmem>>, %arg1: memref<8x8xf32, #tpu.memory_space<vmem>>, %arg2: memref<32x96xf32, #tpu.memory_space<vmem>>, %arg3: memref<32x32xf32, #tpu.memory_space<vmem>>, %arg4: memref<32x32xf32, #tpu.memory_space<vmem>>, %arg5: memref<8x32xf32, #tpu.memory_space<vmem>>) attributes {dimension_semantics = [], scalar_prefetch = 0 : i64, scratch_operands = 0 : i64, tpu.core_type = #tpu.core_type<tc>} {
    %c0 = arith.constant 0 : index
    %c0_0 = arith.constant 0 : index
    %0 = vector.load %arg0[%c0, %c0_0] : memref<8x32xf32, #tpu.memory_space<vmem>>, vector<8x32xf32>
    %c0_1 = arith.constant 0 : index
    %c0_2 = arith.constant 0 : index
    %1 = vector.load %arg1[%c0_1, %c0_2] : memref<8x8xf32, #tpu.memory_space<vmem>>, vector<8x8xf32>
    %c0_3 = arith.constant 0 : index
    %c0_4 = arith.constant 0 : index
    %2 = vector.load %arg4[%c0_3, %c0_4] : memref<32x32xf32, #tpu.memory_space<vmem>>, vector<32x32xf32>
    %c0_5 = arith.constant 0 : index
    %c0_6 = arith.constant 0 : index
    %3 = vector.load %arg2[%c0_5, %c0_6] : memref<32x96xf32, #tpu.memory_space<vmem>>, vector<32x96xf32>
    %cst = arith.constant dense<0.000000e+00> : vector<8x96xf32>
    %4 = tpu.matmul %0, %3, %cst {dimension_numbers = #tpu.dot_dimension_numbers<[1], [0], [0], [1], [0, 0, 1, 1], [], []>} : vector<8x32xf32>, vector<32x96xf32>, vector<8x96xf32> -> vector<8x96xf32>
    %5 = vector.extract_strided_slice %4 {offsets = [0, 0], sizes = [8, 32], strides = [1, 1]} : vector<8x96xf32> to vector<8x32xf32>
    %6 = vector.extract_strided_slice %4 {offsets = [0, 32], sizes = [8, 32], strides = [1, 1]} : vector<8x96xf32> to vector<8x32xf32>
    %7 = vector.extract_strided_slice %4 {offsets = [0, 64], sizes = [8, 32], strides = [1, 1]} : vector<8x96xf32> to vector<8x32xf32>
    %8 = tpu.concatenate %5, %5, %5, %5 in 0 : vector<8x32xf32>, vector<8x32xf32>, vector<8x32xf32>, vector<8x32xf32> -> vector<32x32xf32>
    %9 = arith.mulf %2, %8 : vector<32x32xf32>
    %10 = tpu.concatenate %7, %7, %7, %7 in 0 : vector<8x32xf32>, vector<8x32xf32>, vector<8x32xf32>, vector<8x32xf32> -> vector<32x32xf32>
    %11 = arith.mulf %2, %10 : vector<32x32xf32>
    %cst_7 = arith.constant dense<0.000000e+00> : vector<8x32xf32>
    %12 = tpu.matmul %6, %9, %cst_7 {dimension_numbers = #tpu.dot_dimension_numbers<[1], [1], [0], [0], [0, 0, 1, 0], [], []>} : vector<8x32xf32>, vector<32x32xf32>, vector<8x32xf32> -> vector<8x32xf32>
    %13 = vector.shape_cast %12 : vector<8x32xf32> to vector<8x4x8xf32>
    %cst_8 = arith.constant 0.353553385 : f32
    %14 = vector.broadcast %cst_8 : f32 to vector<8x4x8xf32>
    %15 = arith.mulf %13, %14 : vector<8x4x8xf32>
    %16 = vector.shape_cast %1 : vector<8x8xf32> to vector<8x1x8xf32>
    %17 = vector.broadcast %16 : vector<8x1x8xf32> to vector<8x4x8xf32>
    %18 = arith.addf %15, %17 : vector<8x4x8xf32>
    %cst_9 = arith.constant dense<0xFF800000> : vector<8x4xf32>
    %19 = vector.multi_reduction <maximumf>, %18, %cst_9 [2] : vector<8x4x8xf32> to vector<8x4xf32>
    %20 = vector.shape_cast %19 : vector<8x4xf32> to vector<8x4x1xf32>
    %21 = vector.broadcast %20 : vector<8x4x1xf32> to vector<8x4x8xf32>
    %22 = arith.subf %18, %21 : vector<8x4x8xf32>
    %23 = math.exp %22 : vector<8x4x8xf32>
    %cst_10 = arith.constant dense<0.000000e+00> : vector<8x4xf32>
    %24 = vector.multi_reduction <add>, %23, %cst_10 [2] : vector<8x4x8xf32> to vector<8x4xf32>
    %25 = vector.shape_cast %24 : vector<8x4xf32> to vector<8x4x1xf32>
    %26 = tpu.reciprocal %25 {approx = true} : vector<8x4x1xf32> -> vector<8x4x1xf32>
    %27 = vector.broadcast %26 : vector<8x4x1xf32> to vector<8x4x8xf32>
    %28 = arith.mulf %23, %27 : vector<8x4x8xf32>
    %29 = vector.shape_cast %28 : vector<8x4x8xf32> to vector<8x32xf32>
    %cst_11 = arith.constant dense<0.000000e+00> : vector<8x32xf32>
    %30 = tpu.matmul %29, %11, %cst_11 {dimension_numbers = #tpu.dot_dimension_numbers<[1], [0], [0], [1], [0, 0, 1, 1], [], []>} : vector<8x32xf32>, vector<32x32xf32>, vector<8x32xf32> -> vector<8x32xf32>
    %c0_12 = arith.constant 0 : index
    %c0_13 = arith.constant 0 : index
    %31 = vector.load %arg3[%c0_12, %c0_13] : memref<32x32xf32, #tpu.memory_space<vmem>>, vector<32x32xf32>
    %cst_14 = arith.constant dense<0.000000e+00> : vector<8x32xf32>
    %32 = tpu.matmul %30, %31, %cst_14 {dimension_numbers = #tpu.dot_dimension_numbers<[1], [0], [0], [1], [0, 0, 1, 1], [], []>} : vector<8x32xf32>, vector<32x32xf32>, vector<8x32xf32> -> vector<8x32xf32>
    %c0_15 = arith.constant 0 : index
    %c0_16 = arith.constant 0 : index
    %33 = vector.load %arg5[%c0_15, %c0_16] : memref<8x32xf32, #tpu.memory_space<vmem>>, vector<8x32xf32>
    tpu.vector_store %arg5[%c0_15, %c0_16], %32 {strides = array<i32>} : memref<8x32xf32, #tpu.memory_space<vmem>>, vector<8x32xf32>,
    return
  }
}

</mosaic_0001>

<bundles_post_ra>
// kernel: tpu_custom_call.1
= control target key start
LH: loop header
LB: loop body
LE: loop exit
PB: predicated region body
PF: predicated region fallthrough
CT: control target
= control target key end

     0   :  { %10 = vsyncpa [#allocation3], 0  ;;  %s1226_s0 = inlined_call_operand.hbm [shape: f32[8,32], index: 0, kind: input, shape index: {}]   ;;  %s1227_s1 = inlined_call_operand.hbm [shape: f32[8,8], index: 1, kind: input, shape index: {}]   ;;  %s1228_s2 = inlined_call_operand.hbm [shape: f32[32,96], index: 2, kind: input, shape index: {}]   ;;  %s1229_s3 = inlined_call_operand.hbm [shape: f32[32,32], index: 3, kind: input, shape index: {}]   ;;  %s1230_s4 = inlined_call_operand.hbm [shape: f32[32,32], index: 4, kind: input, shape index: {}]   ;;  %s1231_s5 = inlined_call_operand.hbm [shape: f32[8,32], index: 5, kind: output, shape index: {}]  }
   0x1   :  { %11 = vsyncpa [#allocation6], 0 }
   0x2   :  { %12 = vsyncpa [#allocation9], 0 }
   0x3   :  { %13 = vsyncpa [#allocation4], 0  ;;  %s1047_s18 = smov [#allocation5]  }
   0x4   :  { %s30_s19 = sshll.u32 %s1047_s18, 4  ;;  %s31_s19 = int_to_ptr.vmem [resolvable:$true] %s30_s19 }
   0x5   :  { %s927_s20 = scalar_lea.vmem %s31_s19, 128  ;;  %p932_p1 = scmp.lt.s32.totalorder %s31_s19, %s31_s19 }
   0x6   :  { %p928_p0 = scmp.ne.s32.totalorder %s31_s19, %s927_s20  ;;  %p933_p2 = scmp.lt.s32.totalorder %s927_s20, %s927_s20 }
   0x8   :  { %p934_p3 = por %p933_p2, %p932_p1 }
   0xa   :  { %p935_p4 = pnand %p934_p3, %p928_p0 }
   0xc   :  { %938 = shalt.err (!%p935_p4)
}
   0xd   :  { %33 = dma.hbm_to_vmem [thread:$0]  %s1227_s1, 128, %s31_s19, [#allocation6]  }
   0xe   :  { %s1048_s23 = smov [#allocation8]   ;;  %s1049_s25 = smov [#allocation2]  }
   0xf   :  { %s51_s24 = sshll.u32 %s1048_s23, 4  ;;  %s20_s26 = sshll.u32 %s1049_s25, 4  ;;  %s52_s24 = int_to_ptr.vmem [resolvable:$true] %s51_s24  ;;  %s21_s26 = int_to_ptr.vmem [resolvable:$true] %s20_s26 }
  0x10   :  { %s947_s27 = scalar_lea.vmem %s52_s24, 512  ;;  %p952_p6 = scmp.lt.s32.totalorder %s52_s24, %s52_s24 }
  0x11   :  { %p948_p5 = scmp.ne.s32.totalorder %s52_s24, %s947_s27  ;;  %p953_p7 = scmp.lt.s32.totalorder %s947_s27, %s947_s27 }
  0x13   :  { %p954_p8 = por %p953_p7, %p952_p6 }
  0x15   :  { %p955_p9 = pnand %p954_p8, %p948_p5 }
  0x17   :  { %958 = shalt.err (!%p955_p9)
}
  0x18   :  { %s1050_s28 = smov 128   ;;  %s1051_s29 = smov 8  }
  0x19   :  { %57 = dma.hbm_to_vmem [thread:$0]  %s1229_s3, 512, %s52_s24, [#allocation9], %s1050_s28, %s1050_s28, %s1051_s29  }
  0x1a   :  { %s967_s1 = scalar_lea.vmem %s21_s26, 128  ;;  %p972_p11 = scmp.lt.s32.totalorder %s21_s26, %s21_s26 }
  0x1b   :  { %p968_p10 = scmp.ne.s32.totalorder %s21_s26, %s967_s1  ;;  %p973_p12 = scmp.lt.s32.totalorder %s967_s1, %s967_s1 }
  0x1d   :  { %p974_p13 = por %p973_p12, %p972_p11 }
  0x1f   :  { %p975_p0 = pnand %p974_p13, %p968_p10 }
  0x21   :  { %978 = shalt.err (!%p975_p0)
}
  0x22   :  { %23 = dma.hbm_to_vmem [thread:$0]  %s1226_s0, 128, %s21_s26, [#allocation3]  }
  0x23   :  { %s1052_s9 = smov [#allocation7]   ;;  %s1053_s11 = smov [#allocation10]  }
  0x24   :  { %s39_s10 = sshll.u32 %s1052_s9, 4  ;;  %s63_s12 = sshll.u32 %s1053_s11, 4  ;;  %s40_s10 = int_to_ptr.vmem [resolvable:$true] %s39_s10  ;;  %s64_s12 = int_to_ptr.vmem [resolvable:$true] %s63_s12 }
  0x25   :  { %s987_s13 = scalar_lea.vmem %s40_s10, 512  ;;  %p992_p2 = scmp.lt.s32.totalorder %s40_s10, %s40_s10 }
  0x26   :  { %p988_p1 = scmp.ne.s32.totalorder %s40_s10, %s987_s13  ;;  %p993_p3 = scmp.lt.s32.totalorder %s987_s13, %s987_s13 }
  0x28   :  { %p994_p4 = por %p993_p3, %p992_p2 }
  0x2a   :  { %p995_p5 = pnand %p994_p4, %p988_p1 }
  0x2c   :  { %998 = shalt.err (!%p995_p5)
}
  0x2d   :  { %45 = dma.hbm_to_vmem [thread:$0]  %s1228_s2, 512, %s40_s10, [#allocation6], %s1050_s28, %s1050_s28, %s1051_s29  }
  0x2e   :  { %s1007_s0 = scalar_lea.vmem %s64_s12, 512  ;;  %p1012_p7 = scmp.lt.s32.totalorder %s64_s12, %s64_s12 }
  0x2f   :  { %p1008_p6 = scmp.ne.s32.totalorder %s64_s12, %s1007_s0  ;;  %p1013_p8 = scmp.lt.s32.totalorder %s1007_s0, %s1007_s0 }
  0x31   :  { %p1014_p9 = por %p1013_p8, %p1012_p7 }
  0x33   :  { %p1015_p10 = pnand %p1014_p9, %p1008_p6 }
  0x35   :  { %1018 = shalt.err (!%p1015_p10)
}
  0x36   :  { %69 = dma.hbm_to_vmem [thread:$0]  %s1230_s4, 512, %s64_s12, [#allocation9], %s1050_s28, %s1050_s28, %s1051_s29  }
  0x37   :  { %1039 = dma.done.wait [#allocation3], 128  }
  0x38   :  { %1040 = vsyncadd [#allocation3], 4294967168 }
  0x39   :  { %1041 = dma.done.wait [#allocation6], 640  }
  0x3a   :  { %1042 = vsyncadd [#allocation6], 4294966656 }
  0x3b   :  { %1043 = dma.done.wait [#allocation9], 1024  }
  0x3c   :  { %1044 = vsyncadd [#allocation9], 4294966272  ;;  %v1054_v0 = vmov 0.0   ;;  %vm1055_vm0 = vmmov 0   ;;  %v94_v1 = vld [vmem:[#allocation7 + $0x18] sm:$0xff]  ;;  %v93_v2 = vld [vmem:[#allocation7 + $0x10] sm:$0xff]  ;;  %v282_v21 = vlaneseq }
  0x3d   :  { %822 = vmatprep.subr.mxu0 %v1054_v0  ;;  %830 = vmatprep.mubr.msk.f32.mxu0 %vm1055_vm0, %v1054_v0  ;;  %v92_v3 = vld [vmem:[#allocation7 + $0x8] sm:$0xff]  ;;  %v91_v4 = vld [vmem:[#allocation7] sm:$0xff]  ;;  %v85_v5 = vld [vmem:[#allocation2] sm:$0xff]  ;;  %vm95_vm1 = vcmask 261120   ;;  %s1056_s2 = smov 96   ;;  %s1057_s4 = smov 112  }
  0x3e   :  { %833 = vmatprep.subr.mxu1 %v1054_v0  ;;  %841 = vmatprep.mubr.msk.f32.mxu1 %vm1055_vm0, %v1054_v0  ;;  %v1134_v6 = vld [vmem:[#allocation10 + $0x18] sm:$0xff]  ;;  %v1141_v10 = vld [vmem:[#allocation10 + $0x10] sm:$0xff]  ;;  %v1147_v12 = vld [vmem:[#allocation10 + $0x8] sm:$0xff]  ;;  %s1058_s17 = smov 120   ;;  %s1059_s18 = smov 104   ;;  %v283_v23 = vshrl.u32 %v282_v21, 7 }
  0x3f   :  { %823 = vmatpush3.msra.mxu0 %v94_v1  ;;  %v1153_v14 = vld [vmem:[#allocation10] sm:$0xff]  ;;  %v1060_v19 = vmov 1966171168   ;;  %v1061_v24 = vmov 1983009808   ;;  %v86_v26 = vld [vmem:[#allocation5] sm:$0xff] }
  0x40   :  { %824 = vmatprep.subr.mxu0 %v1054_v0  ;;  %v356_v20 = vunpack.c.l.s4 %v1060_v19  ;;  %v280_v25 = vunpack.c.l.s4 %v1061_v24  ;;  %v1062_v28 = vmov 1934713408   ;;  %v354_v30 = vcombine.high %v86_v26, %v86_v26  ;;  %s1063_s19 = smov 64   ;;  %s1064_s20 = smov 16  }
  0x41   :  { %825 = vmatpush3.msra.mxu0 %v93_v2  ;;  %v312_v29 = vunpack.c.l.s4 %v1062_v28  ;;  %v405_v47 = vsub.s32 0, %v283_v23  ;;  %vm451_vm2 = vcmask 60416   ;;  %s1065_s21 = smov 24   ;;  %vm620_vm3 = vcmask 64512   ;;  %s1066_s22 = smov [#allocation11]  }
  0x42   :  { %826 = vmatprep.subr.mxu0 %v1054_v0  ;;  %v357_v22 = vunpack.c.0.s8 %v356_v20  ;;  %v281_v31 = vunpack.c.0.s8 %v280_v25  ;;  %vm622_vm4 = vcmask 130048   ;;  %vm624_vm5 = vcmask 195584   ;;  %s783_s23 = sshll.u32 %s1066_s22, 4  ;;  %s784_s23 = int_to_ptr.vmem [resolvable:$true] %s783_s23 }
  0x43   :  { %827 = vmatpush3.msra.mxu0 %v92_v3  ;;  %v313_v34 = vunpack.c.0.s8 %v312_v29  ;;  %s1019_s24 = scalar_lea.vmem %s784_s23, 128  ;;  %p1024_p12 = scmp.lt.s32.totalorder %s784_s23, %s784_s23 }
  0x44   :  { %828 = vmatprep.subr.mxu0 %v1054_v0  ;;  %v360_v27 = vsub.s32 %v357_v22, %v283_v23  ;;  %v1161_v36 = vsub.s32 %v281_v31, %v283_v23  ;;  %p1020_p11 = scmp.ne.s32.totalorder %s784_s23, %s1019_s24  ;;  %p1025_p13 = scmp.lt.s32.totalorder %s1019_s24, %s1019_s24 }
  0x45   :  { %829 = vmatpush3.msra.mxu0 %v91_v4  ;;  %v1163_v45 = vsub.s32 %v313_v34, %v283_v23 }
  0x46   :  { %831 = vmatmul.mubr.msk.f32.vlgmr.msra.gmra.mxu0 %vm95_vm1, %v85_v5  ;;  %844 = vmatprep.subr.mxu0 %v1054_v0  ;;  %v361_v33 = vrot.slane %v86_v26, %v360_v27  ;;  %v368_v35 = vrot.slane %v354_v30, %v360_v27  ;;  %p1026_p0 = por %p1025_p13, %p1024_p12 }
  0x47   :  { %852 = vmatprep.mubr.msk.f32.mxu0 %vm1055_vm0, %v1054_v0 }
  0x48   :  { %v377_v41 = vrot.slane %v361_v33, %v360_v27  ;;  %v369_v42 = vcombine.high %v361_v33, %v361_v33  ;;  %v384_v46 = vrot.slane %v368_v35, %v360_v27  ;;  %v370_v60 = vcombine.high %v368_v35, %v368_v35  ;;  %p1027_p1 = pnand %p1026_p0, %p1020_p11 }
  0x4a   :  { %v399_v52 = vcombine.high %v377_v41, %v377_v41  ;;  %v391_v53 = vrot.slane %v369_v42, %v360_v27  ;;  %v422_v58 = vrot.slane %v384_v46, %v405_v47  ;;  %v400_v59 = vcombine.high %v384_v46, %v384_v46 }
  0x4b   :  { %v406_v63 = vrot.slane %v377_v41, %v405_v47 }
  0x4c   :  { %v414_v2 = vrot.slane %v399_v52, %v405_v47  ;;  %v410_v3 = vrot.slane %v391_v53, %v405_v47  ;;  %v401_v4 = vcombine.high %v391_v53, %v391_v53  ;;  %v430_v20 = vrot.slane %v400_v59, %v405_v47 }
  0x4e   :  { %v418_v22 = vrot.slane %v401_v4, %v405_v47 }
 0x106   :  { %v1136_v7 = vpop.f32.mrf.mxu0 }
 0x107   :  { %181 = vrot.lane.b32.xlu0 %v1136_v7, %s1056_s2  ;;  %v172_v8 = vmul.f32 %v1136_v7, %v1134_v6  ;;  %v171_v11 = vmul.f32 %v1136_v7, %v1141_v10  ;;  %v170_v13 = vmul.f32 %v1136_v7, %v1147_v12  ;;  %v169_v15 = vmul.f32 %v1136_v7, %v1153_v14 }
 0x108   :  { %v832_v9 = vpop.f32.mrf.mxu0 }
 0x109   :  { %834 = vmatpush3.xpose.msk.msra.mxu1 %vm95_vm1, %v172_v8 }
 0x10a   :  { %835 = vmatprep.subr.mxu1 %v1054_v0 }
 0x10d   :  { %836 = vmatpush3.xpose.msk.msra.mxu1 %vm95_vm1, %v171_v11 }
 0x10e   :  { %837 = vmatprep.subr.mxu1 %v1054_v0 }
 0x111   :  { %838 = vmatpush3.xpose.msk.msra.mxu1 %vm95_vm1, %v170_v13 }
 0x112   :  { %839 = vmatprep.subr.mxu1 %v1054_v0 }
 0x115   :  { %840 = vmatpush3.xpose.msk.msra.mxu1 %vm95_vm1, %v169_v15 }
 0x179   :  { %v182_v16 = vpop.permute.xlu0 %181 }
 0x17a   :  { %842 = vmatmul.mubr.msk.f32.vlgmr.msra.gmra.mxu1 %vm95_vm1, %v182_v16  ;;  %v398_v16 = vrot.slane %v370_v60, %v360_v27 }
 0x17c   :  { %v426_v31 = vrot.slane %v398_v16, %v405_v47 }
 0x23a   :  { %v263_v17 = vpop.f32.mrf.mxu1 }
 0x23b   :  { %271 = vrot.lane.b32.xlu1 %v263_v17, %s1057_s4  ;;  %268 = vrot.lane.b32.xlu0 %v263_v17, %s1058_s17 }
 0x23c   :  { %v843_v18 = vpop.f32.mrf.mxu1 }
 0x23f   :  { %274 = vrot.lane.b32.xlu1 %v263_v17, %s1059_s18 }
 0x2ad   :  { %v272_v32 = vpop.permute.xlu1 %271  ;;  %v269_v39 = vpop.permute.xlu0 %268 }
 0x2ae   :  { %v277_v37 = vcombine.low %v263_v17, %v272_v32  ;;  %v278_v38 = vcombine.high %v263_v17, %v272_v32  ;;  %v402_v32 = vcombine.high %v398_v16, %v398_v16 }
 0x2b0   :  { %v285_v48 = vrot.slane %v277_v37, %v1161_v36  ;;  %v292_v49 = vrot.slane %v278_v38, %v1161_v36  ;;  %v434_v38 = vrot.slane %v402_v32, %v405_v47 }
 0x2b1   :  { %v275_v40 = vpop.permute.xlu1 %274 }
 0x2b2   :  { %v293_v43 = vcombine.low %v269_v39, %v275_v40  ;;  %v294_v44 = vcombine.high %v269_v39, %v275_v40 }
 0x2b4   :  { %v301_v50 = vrot.slane %v293_v43, %v1161_v36  ;;  %v308_v51 = vrot.slane %v294_v44, %v1161_v36 }
 0x2b6   :  { %v309_v54 = vcombine.low %v285_v48, %v301_v50  ;;  %v310_v55 = vcombine.high %v285_v48, %v301_v50  ;;  %v325_v56 = vcombine.low %v292_v49, %v308_v51  ;;  %v326_v57 = vcombine.high %v292_v49, %v308_v51 }
 0x2b8   :  { %v333_v61 = vrot.slane %v325_v56, %v1163_v45  ;;  %v317_v62 = vrot.slane %v309_v54, %v1163_v45  ;;  %v324_v1 = vrot.slane %v310_v55, %v1163_v45  ;;  %v340_v5 = vrot.slane %v326_v57, %v1163_v45 }
 0x2ba   :  { %v349_v8 = vmul.f32 0.35355338, %v333_v61  ;;  %v345_v9 = vmul.f32 0.35355338, %v317_v62  ;;  %v347_v11 = vmul.f32 0.35355338, %v324_v1  ;;  %v341_v13 = vcombine.high %v317_v62, %v1054_v0 }
 0x2bb   :  { %v342_v15 = vcombine.high %v324_v1, %v1054_v0  ;;  %v351_v23 = vmul.f32 0.35355338, %v340_v5  ;;  %v343_v24 = vcombine.high %v333_v61, %v1054_v0  ;;  %v344_v27 = vcombine.high %v340_v5, %v1054_v0 }
 0x2bc   :  { %v447_v17 = vadd.f32 %v422_v58, %v349_v8  ;;  %v443_v18 = vadd.f32 %v406_v63, %v345_v9  ;;  %v346_v19 = vmul.f32 0.35355338, %v341_v13  ;;  %v445_v21 = vadd.f32 %v414_v2, %v347_v11 }
 0x2bd   :  { %v348_v29 = vmul.f32 0.35355338, %v342_v15  ;;  %v449_v30 = vadd.f32 %v430_v20, %v351_v23  ;;  %v350_v37 = vmul.f32 0.35355338, %v343_v24  ;;  %v352_v42 = vmul.f32 0.35355338, %v344_v27 }
 0x2be   :  { %v464_v25 = vsel %vm451_vm2, %v447_v17, -inf  ;;  %v452_v26 = vsel %vm451_vm2, %v443_v18, -inf  ;;  %v444_v28 = vadd.f32 %v410_v3, %v346_v19  ;;  %v458_v33 = vsel %vm451_vm2, %v445_v21, -inf }
 0x2bf   :  { %465 = vmax.xlane.f32.xlu1 %v464_v25  ;;  %453 = vmax.xlane.f32.xlu0 %v452_v26  ;;  %v446_v35 = vadd.f32 %v418_v22, %v348_v29  ;;  %v470_v40 = vsel %vm451_vm2, %v449_v30, -inf  ;;  %v448_v41 = vadd.f32 %v426_v31, %v350_v37  ;;  %v450_v44 = vadd.f32 %v434_v38, %v352_v42 }
 0x2c0   :  { %v455_v34 = vsel %vm451_vm2, %v444_v28, -inf }
 0x2c1   :  { %v461_v39 = vsel %vm451_vm2, %v446_v35, -inf  ;;  %v467_v43 = vsel %vm451_vm2, %v448_v41, -inf  ;;  %v473_v46 = vsel %vm451_vm2, %v450_v44, -inf }
 0x2c3   :  { %459 = vmax.xlane.f32.xlu0 %v458_v33  ;;  %456 = vmax.xlane.f32.xlu1 %v455_v34 }
 0x2c7   :  { %462 = vmax.xlane.f32.xlu0 %v461_v39  ;;  %471 = vmax.xlane.f32.xlu1 %v470_v40 }
 0x2cb   :  { %468 = vmax.xlane.f32.xlu0 %v467_v43 }
 0x2cf   :  { %474 = vmax.xlane.f32.xlu0 %v473_v46 }
 0x348   :  { %v466_v48 = vpop.xlane.xlu1 %465  ;;  %v454_v49 = vpop.xlane.xlu0 %453 }
 0x349   :  { %v476_v50 = vsub.f32 %v443_v18, %v454_v49  ;;  %v480_v47 = vsub.f32 %v447_v17, %v466_v48 }
 0x34b   :  { %v484_v51 = vmul.f32 1.442695, %v476_v50  ;;  %v492_v58 = vmul.f32 1.442695, %v480_v47 }
 0x34c   :  { %v460_v52 = vpop.xlane.xlu0 %459  ;;  %v457_v53 = vpop.xlane.xlu1 %456 }
 0x34d   :  { %v478_v54 = vsub.f32 %v445_v21, %v460_v52  ;;  %v477_v55 = vsub.f32 %v444_v28, %v457_v53  ;;  %887 = vpow2.f32 %v484_v51 }
 0x34f   :  { %v488_v56 = vmul.f32 1.442695, %v478_v54  ;;  %v486_v57 = vmul.f32 1.442695, %v477_v55 }
 0x350   :  { %v463_v59 = vpop.xlane.xlu0 %462  ;;  %v472_v60 = vpop.xlane.xlu1 %471 }
 0x351   :  { %889 = vpow2.f32 %v488_v56  ;;  %v479_v61 = vsub.f32 %v446_v35, %v463_v59  ;;  %v482_v62 = vsub.f32 %v449_v30, %v472_v60 }
 0x352   :  { %891 = vpow2.f32 %v486_v57 }
 0x353   :  { %v490_v63 = vmul.f32 1.442695, %v479_v61  ;;  %893 = vpow2.f32 %v492_v58  ;;  %v496_v1 = vmul.f32 1.442695, %v482_v62 }
 0x354   :  { %v469_v2 = vpop.xlane.xlu0 %468 }
 0x355   :  { %895 = vpow2.f32 %v490_v63  ;;  %v481_v3 = vsub.f32 %v448_v41, %v469_v2 }
 0x356   :  { %897 = vpow2.f32 %v496_v1 }
 0x357   :  { %v494_v4 = vmul.f32 1.442695, %v481_v3 }
 0x358   :  { %v475_v5 = vpop.xlane.xlu0 %474 }
 0x359   :  { %899 = vpow2.f32 %v494_v4  ;;  %v483_v8 = vsub.f32 %v450_v44, %v475_v5 }
 0x35a   :  { %v1185_v9 = vpop.eup %887 }
 0x35b   :  { %v498_v11 = vmul.f32 1.442695, %v483_v8  ;;  %v500_v13 = vsel %vm451_vm2, %v1185_v9, 0.0 }
 0x35c   :  { %501 = vadd.xlane.f32.xlu1 %v500_v13 }
 0x35d   :  { %901 = vpow2.f32 %v498_v11 }
 0x35e   :  { %v890_v15 = vpop.eup %889 }
 0x35f   :  { %v892_v16 = vpop.eup %891  ;;  %v506_v17 = vsel %vm451_vm2, %v890_v15, 0.0 }
 0x360   :  { %v503_v18 = vsel %vm451_vm2, %v892_v16, 0.0  ;;  %v894_v19 = vpop.eup %893  ;;  %507 = vadd.xlane.f32.xlu1 %v506_v17 }
 0x361   :  { %504 = vadd.xlane.f32.xlu0 %v503_v18  ;;  %v512_v22 = vsel %vm451_vm2, %v894_v19, 0.0 }
 0x362   :  { %v896_v20 = vpop.eup %895 }
 0x363   :  { %v509_v21 = vsel %vm451_vm2, %v896_v20, 0.0  ;;  %v898_v23 = vpop.eup %897 }
 0x364   :  { %513 = vadd.xlane.f32.xlu1 %v512_v22  ;;  %v518_v26 = vsel %vm451_vm2, %v898_v23, 0.0  ;;  %v701_v22 = vld [vmem:[#allocation8 + $0x10] sm:$0xff] }
 0x365   :  { %510 = vadd.xlane.f32.xlu0 %v509_v21  ;;  %v702_v21 = vld [vmem:[#allocation8 + $0x18] sm:$0xff] }
 0x366   :  { %v900_v24 = vpop.eup %899 }
 0x367   :  { %v515_v25 = vsel %vm451_vm2, %v900_v24, 0.0 }
 0x368   :  { %519 = vadd.xlane.f32.xlu1 %v518_v26 }
 0x369   :  { %516 = vadd.xlane.f32.xlu0 %v515_v25 }
 0x36a   :  { %v902_v28 = vpop.eup %901 }
 0x36b   :  { %v521_v29 = vsel %vm451_vm2, %v902_v28, 0.0 }
 0x36d   :  { %522 = vadd.xlane.f32.xlu0 %v521_v29 }
 0x379   :  { %174 = vrot.lane.b32.xlu1 %v1136_v7, %s1063_s19 }
 0x3e5   :  { %v502_v30 = vpop.xlane.xlu1 %501 }
 0x3e9   :  { %v508_v27 = vpop.xlane.xlu1 %507 }
 0x3ea   :  { %v505_v31 = vpop.xlane.xlu0 %504 }
 0x3eb   :  { %903 = vrcp.f32 %v505_v31 }
 0x3ec   :  { %905 = vrcp.f32 %v508_v27 }
 0x3ed   :  { %v514_v33 = vpop.xlane.xlu1 %513 }
 0x3ee   :  { %v511_v32 = vpop.xlane.xlu0 %510 }
 0x3ef   :  { %907 = vrcp.f32 %v511_v32 }
 0x3f0   :  { %909 = vrcp.f32 %v502_v30 }
 0x3f1   :  { %v520_v35 = vpop.xlane.xlu1 %519  ;;  %911 = vrcp.f32 %v514_v33 }
 0x3f2   :  { %v517_v34 = vpop.xlane.xlu0 %516  ;;  %913 = vrcp.f32 %v520_v35 }
 0x3f3   :  { %915 = vrcp.f32 %v517_v34 }
 0x3f5   :  { %v175_v38 = vpop.permute.xlu1 %174 }
 0x3f6   :  { %v523_v37 = vpop.xlane.xlu0 %522  ;;  %v180_v39 = vmul.f32 %v175_v38, %v1134_v6  ;;  %v179_v40 = vmul.f32 %v175_v38, %v1141_v10  ;;  %v178_v43 = vmul.f32 %v175_v38, %v1147_v12  ;;  %v177_v48 = vmul.f32 %v175_v38, %v1153_v14 }
 0x3f7   :  { %917 = vrcp.f32 %v523_v37 }
 0x3f8   :  { %v904_v7 = vpop.eup %903  ;;  %845 = vmatpush3.msra.mxu0 %v180_v39 }
 0x3f9   :  { %v906_v41 = vpop.eup %905  ;;  %846 = vmatprep.subr.mxu0 %v1054_v0  ;;  %v533_v6 = vmul.f32 %v904_v7, %v892_v16 }
 0x3fa   :  { %847 = vmatpush3.msra.mxu0 %v179_v40  ;;  %v534_v49 = vmul.f32 %v906_v41, %v890_v15 }
 0x3fb   :  { %848 = vmatprep.subr.mxu0 %v1054_v0 }
 0x3fc   :  { %v908_v42 = vpop.eup %907  ;;  %849 = vmatpush3.msra.mxu0 %v178_v43 }
 0x3fd   :  { %v535_v44 = vmul.f32 %v908_v42, %v896_v20  ;;  %v910_v46 = vpop.eup %909  ;;  %850 = vmatprep.subr.mxu0 %v1054_v0 }
 0x3fe   :  { %v912_v10 = vpop.eup %911  ;;  %851 = vmatpush3.msra.mxu0 %v177_v48  ;;  %v532_v51 = vmul.f32 %v910_v46, %v1185_v9 }
 0x3ff   :  { %v914_v50 = vpop.eup %913  ;;  %v548_v47 = vcombine.low %v533_v6, %v535_v44  ;;  %855 = vmatprep.subr.mxu0 %v1054_v0  ;;  %v536_v53 = vmul.f32 %v912_v10, %v894_v19 }
 0x400   :  { %v916_v12 = vpop.eup %915  ;;  %v538_v52 = vmul.f32 %v914_v50, %v898_v23  ;;  %v540_v54 = vcombine.low %v532_v51, %v534_v49  ;;  %v700_v23 = vld [vmem:[#allocation8 + $0x8] sm:$0xff] }
 0x401   :  { %v537_v56 = vmul.f32 %v916_v12, %v900_v24  ;;  %v555_v57 = vrot.slane %v548_v47, %v1161_v36  ;;  %v699_v24 = vld [vmem:[#allocation8] sm:$0xff] }
 0x402   :  { %v556_v58 = vcombine.low %v536_v53, %v538_v52  ;;  %v547_v59 = vrot.slane %v540_v54, %v1161_v36 }
 0x404   :  { %v918_v55 = vpop.eup %917  ;;  %v563_v61 = vrot.slane %v556_v58, %v1161_v36  ;;  %v573_v63 = vcombine.high %v547_v59, %v555_v57  ;;  %v572_v1 = vcombine.low %v547_v59, %v555_v57 }
 0x405   :  { %v539_v14 = vmul.f32 %v918_v55, %v902_v28 }
 0x406   :  { %v587_v4 = vrot.slane %v573_v63, %v1163_v45  ;;  %v580_v8 = vrot.slane %v572_v1, %v1163_v45 }
 0x407   :  { %v564_v60 = vcombine.low %v537_v56, %v539_v14 }
 0x409   :  { %v571_v62 = vrot.slane %v564_v60, %v1161_v36 }
 0x40b   :  { %v589_v2 = vcombine.high %v563_v61, %v571_v62  ;;  %v588_v3 = vcombine.low %v563_v61, %v571_v62 }
 0x40d   :  { %v603_v5 = vrot.slane %v589_v2, %v1163_v45  ;;  %v596_v9 = vrot.slane %v588_v3, %v1163_v45 }
 0x40f   :  { %v606_v11 = vcombine.low %v587_v4, %v603_v5  ;;  %v605_v13 = vcombine.high %v580_v8, %v596_v9  ;;  %v604_v15 = vcombine.low %v580_v8, %v596_v9  ;;  %v607_v36 = vcombine.high %v587_v4, %v603_v5 }
 0x411   :  { %613 = vrot.lane.b32.xlu1 %v606_v11, %s1064_s20  ;;  %609 = vrot.lane.b32.xlu0 %v605_v13, %s1051_s29 }
 0x415   :  { %617 = vrot.lane.b32.xlu1 %v607_v36, %s1065_s21 }
 0x483   :  { %v610_v16 = vpop.permute.xlu0 %609  ;;  %v614_v17 = vpop.permute.xlu1 %613 }
 0x484   :  { %v621_v18 = vsel %vm620_vm3, %v604_v15, %v610_v16 }
 0x485   :  { %v623_v19 = vsel %vm622_vm4, %v621_v18, %v614_v17 }
 0x487   :  { %v618_v20 = vpop.permute.xlu1 %617 }
 0x488   :  { %v625_v45 = vsel %vm624_vm5, %v623_v19, %v618_v20 }
 0x489   :  { %853 = vmatmul.mubr.msk.f32.vlgmr.msra.gmra.mxu0 %vm95_vm1, %v625_v45 }
 0x48a   :  { %856 = vmatpush3.msra.mxu0 %v702_v21  ;;  %863 = vmatprep.mubr.msk.f32.mxu0 %vm1055_vm0, %v1054_v0 }
 0x48b   :  { %857 = vmatprep.subr.mxu0 %v1054_v0 }
 0x48c   :  { %858 = vmatpush3.msra.mxu0 %v701_v22 }
 0x48d   :  { %859 = vmatprep.subr.mxu0 %v1054_v0 }
 0x48e   :  { %860 = vmatpush3.msra.mxu0 %v700_v23 }
 0x48f   :  { %861 = vmatprep.subr.mxu0 %v1054_v0 }
 0x490   :  { %862 = vmatpush3.msra.mxu0 %v699_v24 }
 0x549   :  { %v695_v25 = vpop.f32.mrf.mxu0 }
 0x54a   :  { %864 = vmatmul.mubr.msk.f32.vlgmr.msra.gmra.mxu0 %vm95_vm1, %v695_v25 }
 0x54b   :  { %v854_v26 = vpop.f32.mrf.mxu0 }
 0x60a   :  { %v772_v28 = vpop.f32.mrf.mxu0 }
 0x60b   :  { %776 = vst.msk [vmem:[#allocation11] sm:$0xff] %vm95_vm1, %v772_v28 }
 0x60c   :  { %v865_v29 = vpop.f32.mrf.mxu0 }
 0x60d   :  { %1030 = shalt.err (!%p1027_p1)
}
 0x60e   :  { %786 = dma.vmem_to_hbm [thread:$0]  %s784_s23, 128, %s1231_s5, [#allocation4]  }
 0x60f   :  { %1045 = dma.done.wait [#allocation4], 128  }
 0x610   :  { %1046 = vsyncadd [#allocation4], 4294967168 }
 0x611   :  { %790 = vsyncpa [#allocation3], 1 }
 0x612   :  { %791 = vsyncpa [#allocation6], 1 }
 0x613   :  { %792 = vsyncpa [#allocation9], 1 }
 0x614   :  { %793 = vsyncpa [#allocation4], 1 }

</bundles_post_ra>
